<compile_context>
chip_gen: v7x
topology: tpu7x:2x2x1
jax: 0.10.0
libtpu: 0.0.40
codegen_flags: <defaults>
</compile_context>

<pallas_src>
import functools

import jax
import jax.numpy as jnp
from jax.experimental import pallas as pl
from jax.experimental.pallas import tpu as pltpu

_EPS = 1e-6
_LANES = 128           # vreg lane width
_MAX_BLOCK_ROWS = 1024  # (1024,128) f32 tile = 512 KiB / input / buffer


def _round_up(n, m):
    return ((n + m - 1) // m) * m


def _charbonnier_kernel(x_ref, y_ref, o_ref, acc_ref, *,
                        blocks_per_core, num_blocks, tail_valid):
    c = pl.program_id(0)            # outer ("parallel") axis — TC shard
    j = pl.program_id(1)            # sequential reduction axis on this core
    gb = c * blocks_per_core + j    # global block index
    last = num_blocks - 1           # static python int

    @pl.when(j == 0)
    def _():
        acc_ref[...] = jnp.zeros_like(acc_ref)

    x = x_ref[...].astype(jnp.float32)
    y = y_ref[...].astype(jnp.float32)
    diff = x - y
    err = jnp.sqrt(diff * diff + jnp.float32(_EPS))

    rows, cols = err.shape          # static block shape

    def accumulate(e):
        # Fold the (rows,128) tile into the (8,128) accumulator: pure VALU
        # adds over the leading axis, no cross-lane (XLU) work per step.
        acc_ref[...] += e.reshape(rows // 8, 8, cols).sum(axis=0)

    # Interior blocks: no masking at all.
    @pl.when(gb < last)
    def _():
        accumulate(err)

    # Final (possibly ragged) block: mask lane padding + Pallas row padding.
    @pl.when(gb == last)
    def _():
        if tail_valid < rows * cols:     # static compile-time decision
            rid = jax.lax.broadcasted_iota(jnp.int32, (rows, cols), 0)
            cid = jax.lax.broadcasted_iota(jnp.int32, (rows, cols), 1)
            flat = rid * cols + cid      # block-local index: no i32 overflow
            accumulate(jnp.where(flat < tail_valid, err, 0.0))
        else:
            accumulate(err)

    # Grid-padding blocks (gb > last) contribute nothing.

    @pl.when(j == blocks_per_core - 1)
    def _():
        o_ref[0] = acc_ref[...]          # per-core (8,128) partial sums


def l1_charbonnier_loss(x, y):
    """Pallas TPU implementation of L1_Charbonnier_loss.forward(X, Y)."""
    assert x.shape == y.shape, "X and Y must have the same shape"
    total = int(x.size)
    assert total > 0

    xf = x.reshape(-1)
    yf = y.reshape(-1)

    # Pad only the (<128 element) lane remainder; padded zeros are masked out
    # inside the kernel's final block.  When numel % 128 == 0 (the common
    # case) there is no pad and therefore no extra HBM copy at all.
    lane_pad = (-total) % _LANES
    if lane_pad:
        xf = jnp.pad(xf, (0, lane_pad))
        yf = jnp.pad(yf, (0, lane_pad))

    rows = (total + lane_pad) // _LANES
    x2d = xf.reshape(rows, _LANES)
    y2d = yf.reshape(rows, _LANES)

    block_rows = min(_MAX_BLOCK_ROWS, _round_up(rows, 8))
    block_elems = block_rows * _LANES
    num_blocks = pl.cdiv(rows, block_rows)

    # Shard the reduction across (up to) two TensorCores: helps v7x, and the
    # extra "parallel" axis is just a relabelled sequential loop on v5e/v6e.
    num_cores = 2 if num_blocks >= 2 else 1
    blocks_per_core = pl.cdiv(num_blocks, num_cores)

    # Number of valid elements inside the final block (static python int).
    tail_valid = total - (num_blocks - 1) * block_elems

    def in_map(c, j):
        # Clamp grid-padding steps to the last real block; their contribution
        # is skipped inside the kernel.
        return (jnp.minimum(c * blocks_per_core + j, num_blocks - 1), 0)

    kernel = functools.partial(
        _charbonnier_kernel,
        blocks_per_core=blocks_per_core,
        num_blocks=num_blocks,
        tail_valid=tail_valid,
    )

    partials = pl.pallas_call(
        kernel,
        out_shape=jax.ShapeDtypeStruct((num_cores, 8, _LANES), jnp.float32),
        grid_spec=pltpu.PrefetchScalarGridSpec(
            num_scalar_prefetch=0,
            grid=(num_cores, blocks_per_core),
            in_specs=[
                pl.BlockSpec((block_rows, _LANES), in_map),
                pl.BlockSpec((block_rows, _LANES), in_map),
            ],
            out_specs=pl.BlockSpec((1, 8, _LANES), lambda c, j: (c, 0, 0)),
            scratch_shapes=[pltpu.VMEM((8, _LANES), jnp.float32)],
        ),
        compiler_params=pltpu.CompilerParams(
            dimension_semantics=("parallel", "arbitrary"),
        ),
    )(x2d, y2d)

    return jnp.sum(partials)


if __name__ == "__main__":
    key = jax.random.PRNGKey(0)
    kx, ky = jax.random.split(key)

    # NCHW inputs, matching the PyTorch module's usage.
    shape = (2, 4, 16, 16)
    X = jax.random.normal(kx, shape, dtype=jnp.float32)
    Y = jax.random.normal(ky, shape, dtype=jnp.float32)

    loss = jax.block_until_ready(l1_charbonnier_loss(X, Y))
    diff = X - Y
    ref = jnp.sum(jnp.sqrt(diff * diff + _EPS))
    assert jnp.allclose(loss, ref, rtol=1e-5, atol=1e-5), (loss, ref)

    # Ragged case (numel not a multiple of 128) exercising the tail-mask path.
    shape2 = (2, 3, 7, 5)
    X2 = jax.random.normal(kx, shape2, dtype=jnp.float32)
    Y2 = jax.random.normal(ky, shape2, dtype=jnp.float32)
    loss2 = jax.block_until_ready(l1_charbonnier_loss(X2, Y2))
    d2 = X2 - Y2
    ref2 = jnp.sum(jnp.sqrt(d2 * d2 + _EPS))
    assert jnp.allclose(loss2, ref2, rtol=1e-5, atol=1e-5), (loss2, ref2)

    print("KERNEL_OK")
</pallas_src>

<mosaic_0001>
module attributes {stable_mosaic.version = 11 : i64} {
  func.func @_charbonnier_kernel(%arg0: i32, %arg1: i32, %arg2: memref<16x128xf32, #tpu.memory_space<vmem>>, %arg3: memref<16x128xf32, #tpu.memory_space<vmem>>, %arg4: memref<1x8x128xf32, #tpu.memory_space<vmem>>, %arg5: memref<8x128xf32, #tpu.memory_space<vmem>>) attributes {dimension_semantics = [#tpu.dimension_semantics<parallel>, #tpu.dimension_semantics<arbitrary>], iteration_bounds = array<i64: 1, 1>, scalar_prefetch = 0 : i64, scratch_operands = 1 : i64, tpu.core_type = #tpu.core_type<tc>, window_params = [{transform_indices = @transform_0, window_bounds = array<i64: 16, 128>}, {transform_indices = @transform_1, window_bounds = array<i64: 16, 128>}, {transform_indices = @transform_2, window_bounds = array<i64: 1, 8, 128>}]} {
    %c1_i32 = arith.constant 1 : i32
    %0 = arith.muli %arg0, %c1_i32 : i32
    %1 = arith.addi %0, %arg1 : i32
    %c0_i32 = arith.constant 0 : i32
    %2 = arith.cmpi eq, %arg1, %c0_i32 : i32
    %3 = arith.extui %2 : i1 to i32
    %c0_i32_0 = arith.constant 0 : i32
    %4 = arith.cmpi ne, %3, %c0_i32_0 : i32
    scf.if %4 {
      %cst_10 = arith.constant 0.000000e+00 : f32
      %21 = vector.broadcast %cst_10 : f32 to vector<8x128xf32>
      %c0_11 = arith.constant 0 : index
      %c0_12 = arith.constant 0 : index
      %22 = vector.load %arg5[%c0_11, %c0_12] : memref<8x128xf32, #tpu.memory_space<vmem>>, vector<8x128xf32>
      tpu.vector_store %arg5[%c0_11, %c0_12], %21 {strides = array<i32>} : memref<8x128xf32, #tpu.memory_space<vmem>>, vector<8x128xf32>,
    } else {
    }
    %c0 = arith.constant 0 : index
    %c0_1 = arith.constant 0 : index
    %5 = vector.load %arg2[%c0, %c0_1] : memref<16x128xf32, #tpu.memory_space<vmem>>, vector<16x128xf32>
    %c0_2 = arith.constant 0 : index
    %c0_3 = arith.constant 0 : index
    %6 = vector.load %arg3[%c0_2, %c0_3] : memref<16x128xf32, #tpu.memory_space<vmem>>, vector<16x128xf32>
    %7 = arith.subf %5, %6 : vector<16x128xf32>
    %8 = arith.mulf %7, %7 : vector<16x128xf32>
    %cst = arith.constant 9.99999997E-7 : f32
    %9 = vector.broadcast %cst : f32 to vector<16x128xf32>
    %10 = arith.addf %8, %9 : vector<16x128xf32>
    %11 = math.sqrt %10 : vector<16x128xf32>
    %c0_i32_4 = arith.constant 0 : i32
    %12 = arith.cmpi slt, %1, %c0_i32_4 : i32
    %13 = arith.extui %12 : i1 to i32
    %c0_i32_5 = arith.constant 0 : i32
    %14 = arith.cmpi ne, %13, %c0_i32_5 : i32
    scf.if %14 {
      %c0_10 = arith.constant 0 : index
      %c0_11 = arith.constant 0 : index
      %21 = vector.load %arg5[%c0_10, %c0_11] : memref<8x128xf32, #tpu.memory_space<vmem>>, vector<8x128xf32>
      %22 = vector.shape_cast %11 : vector<16x128xf32> to vector<2x8x128xf32>
      %cst_12 = arith.constant dense<0.000000e+00> : vector<8x128xf32>
      %23 = vector.multi_reduction <add>, %22, %cst_12 [0] : vector<2x8x128xf32> to vector<8x128xf32>
      %24 = arith.addf %21, %23 : vector<8x128xf32>
      %c0_13 = arith.constant 0 : index
      %c0_14 = arith.constant 0 : index
      %25 = vector.load %arg5[%c0_13, %c0_14] : memref<8x128xf32, #tpu.memory_space<vmem>>, vector<8x128xf32>
      tpu.vector_store %arg5[%c0_13, %c0_14], %24 {strides = array<i32>} : memref<8x128xf32, #tpu.memory_space<vmem>>, vector<8x128xf32>,
    } else {
    }
    %c0_i32_6 = arith.constant 0 : i32
    %15 = arith.cmpi eq, %1, %c0_i32_6 : i32
    %16 = arith.extui %15 : i1 to i32
    %c0_i32_7 = arith.constant 0 : i32
    %17 = arith.cmpi ne, %16, %c0_i32_7 : i32
    scf.if %17 {
      %c0_10 = arith.constant 0 : index
      %c0_11 = arith.constant 0 : index
      %21 = vector.load %arg5[%c0_10, %c0_11] : memref<8x128xf32, #tpu.memory_space<vmem>>, vector<8x128xf32>
      %22 = vector.shape_cast %11 : vector<16x128xf32> to vector<2x8x128xf32>
      %cst_12 = arith.constant dense<0.000000e+00> : vector<8x128xf32>
      %23 = vector.multi_reduction <add>, %22, %cst_12 [0] : vector<2x8x128xf32> to vector<8x128xf32>
      %24 = arith.addf %21, %23 : vector<8x128xf32>
      %c0_13 = arith.constant 0 : index
      %c0_14 = arith.constant 0 : index
      %25 = vector.load %arg5[%c0_13, %c0_14] : memref<8x128xf32, #tpu.memory_space<vmem>>, vector<8x128xf32>
      tpu.vector_store %arg5[%c0_13, %c0_14], %24 {strides = array<i32>} : memref<8x128xf32, #tpu.memory_space<vmem>>, vector<8x128xf32>,
    } else {
    }
    %c0_i32_8 = arith.constant 0 : i32
    %18 = arith.cmpi eq, %arg1, %c0_i32_8 : i32
    %19 = arith.extui %18 : i1 to i32
    %c0_i32_9 = arith.constant 0 : i32
    %20 = arith.cmpi ne, %19, %c0_i32_9 : i32
    scf.if %20 {
      %c0_10 = arith.constant 0 : index
      %c0_11 = arith.constant 0 : index
      %21 = vector.load %arg5[%c0_10, %c0_11] : memref<8x128xf32, #tpu.memory_space<vmem>>, vector<8x128xf32>
      %c0_12 = arith.constant 0 : index
      %c0_13 = arith.constant 0 : index
      %c0_14 = arith.constant 0 : index
      %22 = vector.load %arg4[%c0_12, %c0_13, %c0_14] : memref<1x8x128xf32, #tpu.memory_space<vmem>>, vector<1x8x128xf32>
      %23 = vector.shape_cast %22 : vector<1x8x128xf32> to vector<8x128xf32>
      %24 = vector.shape_cast %21 : vector<8x128xf32> to vector<1x8x128xf32>
      tpu.vector_store %arg4[%c0_12, %c0_13, %c0_14], %24 {strides = array<i32>} : memref<1x8x128xf32, #tpu.memory_space<vmem>>, vector<1x8x128xf32>,
    } else {
    }
    return
  }
  func.func @transform_0(%arg0: i32, %arg1: i32) -> (i32, i32) {
    %c1_i32 = arith.constant 1 : i32
    %0 = arith.muli %arg0, %c1_i32 : i32
    %1 = arith.addi %0, %arg1 : i32
    %c0_i32 = arith.constant 0 : i32
    %2 = arith.minsi %1, %c0_i32 : i32
    %c0_i32_0 = arith.constant 0 : i32
    %c0_i32_1 = arith.constant 0 : i32
    return %2, %c0_i32_0 : i32, i32
  }
  func.func @transform_1(%arg0: i32, %arg1: i32) -> (i32, i32) {
    %c1_i32 = arith.constant 1 : i32
    %0 = arith.muli %arg0, %c1_i32 : i32
    %1 = arith.addi %0, %arg1 : i32
    %c0_i32 = arith.constant 0 : i32
    %2 = arith.minsi %1, %c0_i32 : i32
    %c0_i32_0 = arith.constant 0 : i32
    %c0_i32_1 = arith.constant 0 : i32
    return %2, %c0_i32_0 : i32, i32
  }
  func.func @transform_2(%arg0: i32, %arg1: i32) -> (i32, i32, i32) {
    %c0_i32 = arith.constant 0 : i32
    %c0_i32_0 = arith.constant 0 : i32
    %c0_i32_1 = arith.constant 0 : i32
    return %arg0, %c0_i32, %c0_i32_0 : i32, i32, i32
  }
}

</mosaic_0001>

<bundles_post_ra>
// kernel: tpu_custom_call.1
= control target key start
LH: loop header
LB: loop body
LE: loop exit
PB: predicated region body
PF: predicated region fallthrough
CT: control target
= control target key end

     0   :  { %7 = vsyncpa [#allocation4], 0  ;;  %s268_s0 = inlined_call_operand.hbm [shape: f32[16,128], index: 0, kind: input, shape index: {}]   ;;  %s269_s1 = inlined_call_operand.hbm [shape: f32[16,128], index: 1, kind: input, shape index: {}]   ;;  %s270_s2 = inlined_call_operand.hbm [shape: f32[1,8,128], index: 2, kind: output, shape index: {}]  }
   0x1   :  { %8 = vsyncpa [#allocation7], 0 }
   0x2   :  { %9 = vsyncpa [#allocation5], 0  ;;  %s212_s9 = smov [#allocation3]   ;;  %s140_s13 = scalar_lea.hbm %s268_s0, 256 }
   0x3   :  { %s21_s10 = sshll.u32 %s212_s9, 4  ;;  %p141_p0 = scmp.ne.s32.totalorder %s268_s0, %s140_s13  ;;  %s22_s10 = int_to_ptr.vmem [resolvable:$true] %s21_s10 }
   0x4   :  { %p144_p1 = scmp.lt.u32.totalorder %s140_s13, %s268_s0 }
   0x6   :  { %p146_p2 = pnand %p144_p1, %p141_p0 }
   0x8   :  { %149 = shalt.err (!%p146_p2)
}
   0x9   :  { %s150_s18 = scalar_lea.vmem %s22_s10, 256  ;;  %p155_p4 = scmp.lt.s32.totalorder %s22_s10, %s22_s10 }
   0xa   :  { %p151_p3 = scmp.ne.s32.totalorder %s22_s10, %s150_s18  ;;  %p156_p5 = scmp.lt.s32.totalorder %s150_s18, %s150_s18 }
   0xc   :  { %p157_p6 = por %p156_p5, %p155_p4 }
   0xe   :  { %p158_p7 = pnand %p157_p6, %p151_p3 }
  0x10   :  { %161 = shalt.err (!%p158_p7)
}
  0x11   :  { %s213_s19 = smov 128   ;;  %s214_s20 = smov 8  }
  0x12   :  { %27 = dma.hbm_to_vmem [thread:$0]  %s268_s0, 256, %s22_s10, [#allocation4], %s213_s19, %s213_s19, %s214_s20  }
  0x13   :  { %s215_s23 = smov [#allocation6]   ;;  %s162_s27 = scalar_lea.hbm %s269_s1, 256 }
  0x14   :  { %s39_s24 = sshll.u32 %s215_s23, 4  ;;  %p163_p8 = scmp.ne.s32.totalorder %s269_s1, %s162_s27  ;;  %s40_s24 = int_to_ptr.vmem [resolvable:$true] %s39_s24 }
  0x15   :  { %p166_p9 = scmp.lt.u32.totalorder %s162_s27, %s269_s1 }
  0x17   :  { %p168_p10 = pnand %p166_p9, %p163_p8 }
  0x19   :  { %171 = shalt.err (!%p168_p10)
}
  0x1a   :  { %s172_s4 = scalar_lea.vmem %s40_s24, 256  ;;  %p177_p12 = scmp.lt.s32.totalorder %s40_s24, %s40_s24 }
  0x1b   :  { %p173_p11 = scmp.ne.s32.totalorder %s40_s24, %s172_s4  ;;  %p178_p13 = scmp.lt.s32.totalorder %s172_s4, %s172_s4 }
  0x1d   :  { %p179_p0 = por %p178_p13, %p177_p12 }
  0x1f   :  { %p180_p1 = pnand %p179_p0, %p173_p11 }
  0x21   :  { %183 = shalt.err (!%p180_p1)
}
  0x22   :  { %45 = dma.hbm_to_vmem [thread:$0]  %s269_s1, 256, %s40_s24, [#allocation7], %s213_s19, %s213_s19, %s214_s20  }
  0x23   :  { %206 = dma.done.wait [#allocation4], 256  }
  0x24   :  { %207 = vsyncadd [#allocation4], 4294967040 }
  0x25   :  { %208 = dma.done.wait [#allocation7], 256  }
  0x26   :  { %209 = vsyncadd [#allocation7], 4294967040  ;;  %v66_v0 = vld [vmem:[#allocation3] sm:$0xff]  ;;  %v67_v1 = vld [vmem:[#allocation3 + $0x8] sm:$0xff]  ;;  %s216_s1 = smov [#allocation8]  }
  0x27   :  { %v68_v2 = vld [vmem:[#allocation6] sm:$0xff]  ;;  %v69_v3 = vld [vmem:[#allocation6 + $0x8] sm:$0xff]  ;;  %s117_s6 = sshll.u32 %s216_s1, 4  ;;  %s118_s6 = int_to_ptr.vmem [resolvable:$true] %s117_s6 }
  0x28   :  { %v70_v4 = vsub.f32 %v66_v0, %v68_v2  ;;  %v71_v5 = vsub.f32 %v67_v1, %v69_v3  ;;  %s184_s7 = scalar_lea.vmem %s118_s6, 128  ;;  %p189_p3 = scmp.lt.s32.totalorder %s118_s6, %s118_s6 }
  0x29   :  { %p185_p2 = scmp.ne.s32.totalorder %s118_s6, %s184_s7  ;;  %p190_p4 = scmp.lt.s32.totalorder %s184_s7, %s184_s7 }
  0x2a   :  { %v72_v6 = vmul.f32 %v70_v4, %v70_v4  ;;  %v73_v7 = vmul.f32 %v71_v5, %v71_v5 }
  0x2b   :  { %p191_p5 = por %p190_p4, %p189_p3 }
  0x2c   :  { %v74_v8 = vadd.f32 1e-06, %v72_v6  ;;  %v75_v9 = vadd.f32 1e-06, %v73_v7 }
  0x2d   :  { %p192_p6 = pnand %p191_p5, %p185_p2 }
  0x2e   :  { %136 = vrsqrt.f32 %v74_v8  ;;  %vm78_vm0 = vcmp.eq.f32.partialorder %v74_v8, inf  ;;  %v81_v11 = vand.u32 2147483648, %v74_v8  ;;  %vm80_vm1 = vcmp.eq.f32.partialorder %v74_v8, 0.0 }
  0x2f   :  { %138 = vrsqrt.f32 %v75_v9  ;;  %vm85_vm2 = vcmp.eq.f32.partialorder %v75_v9, inf  ;;  %v88_v14 = vand.u32 2147483648, %v75_v9  ;;  %vm87_vm3 = vcmp.eq.f32.partialorder %v75_v9, 0.0 }
  0x38   :  { %v137_v10 = vpop.eup %136 }
  0x39   :  { %v139_v12 = vpop.eup %138  ;;  %v77_v13 = vmul.f32 %v137_v10, %v74_v8 }
  0x3a   :  { %v84_v15 = vmul.f32 %v139_v12, %v75_v9 }
  0x3b   :  { %v79_v16 = vsel %vm78_vm0, %v74_v8, %v77_v13 }
  0x3c   :  { %v82_v17 = vsel %vm80_vm1, %v81_v11, %v79_v16  ;;  %v86_v18 = vsel %vm85_vm2, %v75_v9, %v84_v15 }
  0x3d   :  { %v89_v19 = vsel %vm87_vm3, %v88_v14, %v86_v18 }
  0x3e   :  { %v103_v20 = vadd.f32 %v89_v19, %v82_v17 }
  0x40   :  { %110 = vst [vmem:[#allocation8] sm:$0xff] %v103_v20 }
  0x41   :  { %195 = shalt.err (!%p192_p6)
}
  0x42   :  { %s196_s10 = scalar_lea.hbm %s270_s2, 128 }
  0x43   :  { %p197_p7 = scmp.ne.s32.totalorder %s270_s2, %s196_s10  ;;  %p200_p8 = scmp.lt.u32.totalorder %s196_s10, %s270_s2 }
  0x45   :  { %p202_p9 = pnand %p200_p8, %p197_p7 }
  0x47   :  { %205 = shalt.err (!%p202_p9)
}
  0x48   :  { %120 = dma.vmem_to_hbm [thread:$0]  %s118_s6, 128, %s270_s2, [#allocation5]  }
  0x49   :  { %210 = dma.done.wait [#allocation5], 128  }
  0x4a   :  { %211 = vsyncadd [#allocation5], 4294967168 }
  0x4b   :  { %124 = vsyncpa [#allocation4], 1 }
  0x4c   :  { %125 = vsyncpa [#allocation7], 1 }
  0x4d   :  { %126 = vsyncpa [#allocation5], 1 }

</bundles_post_ra>
